<compile_context>
chip_gen: v6e
topology: v6e:2x2x1
jax: 0.10.0
libtpu: 0.0.40
codegen_flags: <defaults>
</compile_context>

<pallas_src>
import jax
import jax.numpy as jnp
from jax.experimental import pallas as pl
from jax.experimental.pallas import tpu as pltpu


# ---------------------------------------------------------------------------
# in-kernel helpers
# ---------------------------------------------------------------------------

def _softmax_lanes(scores):
    """Numerically-stable softmax over the last (lane) axis of a (Tb, S) f32 block."""
    m = jnp.max(scores, axis=-1, keepdims=True)
    p = jnp.exp(scores - m)
    denom = jnp.sum(p, axis=-1, keepdims=True)
    # exact reciprocal (approx=False) keeps parity with the f32 reference
    return p * pl.reciprocal(denom)


# ---------------------------------------------------------------------------
# kernels (one per attention `method`); each grid step handles Tb batch rows.
# Scores are computed lane-dense as (Tb, S); softmax is over the lane axis.
# ---------------------------------------------------------------------------

def _no_query_kernel(x_ref, w_ref, b_ref, out_ref):
    # attn = Linear_{D->1}(x).squeeze(2); softmax over S.
    # The D->1 projection is a VPU broadcast-multiply + lane reduce (no N=1 MXU matmul).
    x = x_ref[...]                                           # (Tb, S, Dp)
    w = w_ref[...]                                           # (1, Dp)
    scores = jnp.sum(x * w[None, :, :], axis=-1)             # (Tb, S)
    scores = scores + b_ref[...]                             # softmax-invariant; kept for fidelity
    out_ref[...] = _softmax_lanes(scores).astype(out_ref.dtype)


def _dot_kernel(x_ref, h_ref, out_ref):
    # attn = bmm(x, hidden).squeeze(2); softmax over S.
    x = x_ref[...]                                           # (Tb, S, Dp)
    h = h_ref[...]                                           # (Tb, 1, Dp)
    scores = jnp.sum(x * h, axis=-1)                         # (Tb, S) lane reduce
    out_ref[...] = _softmax_lanes(scores).astype(out_ref.dtype)


def _general_kernel(x_ref, wT_ref, b_ref, h_ref, out_ref):
    # energy = tanh(Linear_{D->D}(x)); attn = bmm(energy, hidden).squeeze(2); softmax over S.
    x = x_ref[...]                                           # (Tb, S, Dp)
    tb, s, d = x.shape
    x2 = x.reshape(tb * s, d)                                # big-M MXU matmul (M = Tb*S)
    energy = jnp.tanh(
        jnp.dot(x2, wT_ref[...], preferred_element_type=jnp.float32) + b_ref[...])
    energy = energy.reshape(tb, s, d)
    scores = jnp.sum(energy * h_ref[...], axis=-1)           # (Tb, S) VPU mul + lane reduce
    out_ref[...] = _softmax_lanes(scores).astype(out_ref.dtype)


def _concat_kernel(x_ref, wxT_ref, v_ref, vb_ref, hproj_ref, out_ref):
    # energy = tanh(x @ Wx^T + (h @ Wh^T + b)); the hidden-side term is precomputed
    # outside the kernel as hproj (Tb, 1, Dp).  The v-head is a lane reduce.
    x = x_ref[...]                                           # (Tb, S, Dp)
    tb, s, d = x.shape
    x2 = x.reshape(tb * s, d)
    xw = jnp.dot(x2, wxT_ref[...], preferred_element_type=jnp.float32).reshape(tb, s, d)
    energy = jnp.tanh(xw + hproj_ref[...])                   # (Tb, S, Dp)
    scores = jnp.sum(energy * v_ref[...][None, :, :], axis=-1)   # (Tb, S)
    scores = scores + vb_ref[...]                            # softmax-invariant; kept for fidelity
    out_ref[...] = _softmax_lanes(scores).astype(out_ref.dtype)


# ---------------------------------------------------------------------------
# wrapper
# ---------------------------------------------------------------------------

def _round_up(x, m):
    return (x + m - 1) // m * m


def _pad_to(a, shape):
    pads = [(0, t - s) for s, t in zip(a.shape, shape)]
    if all(p == (0, 0) for p in pads):
        return a
    return jnp.pad(a, pads)


def _choose_batch_tile(B, S, Dp, weight_bytes):
    """Rows per grid step so the double-buffered working set stays well under the
    smallest default scoped VMEM (16 MiB on v5e); weights counted double-buffered."""
    budget = 12 * 1024 * 1024
    per_row = (2 * S * Dp + 2 * Dp + 2 * S) * 4      # x + h (2-buffered) + out block
    avail = max(budget - 2 * weight_bytes, per_row)
    tb_max = max(1, avail // per_row)
    if B <= tb_max:
        return B, B                                  # single step covers all rows
    tb = max(8, (tb_max // 8) * 8)                   # multiple of 8 -> dense sublanes
    return tb, _round_up(B, tb)


def inter_attention(encoder_output, hidden, params, *, method):
    """encoder_output: (B, S, D) f32; hidden: (B, D, 1) f32 (PyTorch convention).

    Returns soft attention weights of shape (B, S) (softmax over the sequence axis).
    dropout_p == 0.0 -> dropout is identity (PyTorch applies it before softmax).
    """
    B, S, D = encoder_output.shape
    dtype = encoder_output.dtype
    # Zero-padding the feature axis to a lane multiple is exact for every method
    # (padded columns contribute exactly 0 to every score).
    Dp = _round_up(D, 128)

    h_row = jnp.transpose(hidden, (0, 2, 1))                 # (B, 1, D)

    def full_spec(shape):
        return pl.BlockSpec(shape, lambda i, _s=len(shape): (0,) * _s)

    if method == 'no_query':
        kernel = _no_query_kernel
        const_inputs = [_pad_to(params['w'], (1, Dp)),
                        params['b'].reshape(1, 1)]
        const_specs = [full_spec((1, Dp)), full_spec((1, 1))]
        bat_inputs = []
    elif method == 'dot':
        kernel = _dot_kernel
        const_inputs, const_specs = [], []
        bat_inputs = [_pad_to(h_row, (B, 1, Dp))]
    elif method == 'general':
        kernel = _general_kernel
        w, bias = params['w'], params['b']                   # (D, D), (D,)
        const_inputs = [_pad_to(w.T, (Dp, Dp)),
                        _pad_to(bias.reshape(1, D), (1, Dp))]
        const_specs = [full_spec((Dp, Dp)), full_spec((1, Dp))]
        bat_inputs = [_pad_to(h_row, (B, 1, Dp))]
    elif method == 'concat':
        kernel = _concat_kernel
        w, bias = params['w'], params['b']                   # (D, 2D), (D,)
        v_w, v_b = params['v_w'], params['v_b']              # (1, D), (1,)
        whT = w[:, :D].T                                     # hidden part of the concat
        wxT = _pad_to(w[:, D:].T, (Dp, Dp))                  # encoder_output part
        h_proj = h_row @ whT + bias                          # (B, 1, D) once, outside the kernel
        const_inputs = [wxT,
                        _pad_to(v_w, (1, Dp)),
                        v_b.reshape(1, 1)]
        const_specs = [full_spec((Dp, Dp)), full_spec((1, Dp)), full_spec((1, 1))]
        bat_inputs = [_pad_to(h_proj, (B, 1, Dp))]
    else:
        raise ValueError(f"unknown method: {method}")

    weight_bytes = sum(int(a.size) * a.dtype.itemsize for a in const_inputs)
    # TODO(synk): for very large D (Dp*Dp f32 weight approaching the VMEM budget)
    # the weight should be K-tiled over a second grid axis instead of kept resident.
    Tb, B_pad = _choose_batch_tile(B, S, Dp, weight_bytes)

    x_pad = _pad_to(encoder_output, (B_pad, S, Dp))
    bat_inputs = [_pad_to(a, (B_pad,) + a.shape[1:]) for a in bat_inputs]

    x_spec = pl.BlockSpec((Tb, S, Dp), lambda i: (i, 0, 0))
    h_spec = pl.BlockSpec((Tb, 1, Dp), lambda i: (i, 0, 0))
    out_spec = pl.BlockSpec((Tb, S), lambda i: (i, 0))       # lane-dense (S on lanes)

    inputs = [x_pad] + const_inputs + bat_inputs
    in_specs = [x_spec] + const_specs + [h_spec] * len(bat_inputs)

    out = pl.pallas_call(
        kernel,
        out_shape=jax.ShapeDtypeStruct((B_pad, S), dtype),
        grid_spec=pltpu.PrefetchScalarGridSpec(
            num_scalar_prefetch=0,
            grid=(B_pad // Tb,),
            in_specs=in_specs,
            out_specs=out_spec),
        compiler_params=pltpu.CompilerParams(
            dimension_semantics=("parallel",),               # batch tiles shard across TCs
            vmem_limit_bytes=32 * 1024 * 1024),
    )(*inputs)

    # TODO(synk): attn_mask (masked_fill_ with -inf before softmax) is not plumbed
    # through the kernel; the reference default (attn_mask=None) is reproduced.
    return out[:B]                                           # (B, S)


# ---------------------------------------------------------------------------
# deterministic parameter init (PyTorch nn.Linear default: U(-1/sqrt(in), 1/sqrt(in)))
# ---------------------------------------------------------------------------

def _linear_params(key, out_features, in_features):
    kw, kb = jax.random.split(key)
    bound = 1.0 / float(in_features) ** 0.5
    w = jax.random.uniform(kw, (out_features, in_features), jnp.float32, -bound, bound)
    b = jax.random.uniform(kb, (out_features,), jnp.float32, -bound, bound)
    return w, b


# ---------------------------------------------------------------------------
# main
# ---------------------------------------------------------------------------

if __name__ == "__main__":
    key = jax.random.PRNGKey(0)
    B, S, H = 2, 8, 16
    D = 2 * H
    ks = jax.random.split(key, 6)

    encoder_output = jax.random.normal(ks[0], (B, S, D), jnp.float32)
    hidden = jax.random.normal(ks[1], (B, D, 1), jnp.float32)

    # ---- method='general' (primary) ----
    gw, gb = _linear_params(ks[2], D, D)
    out_general = jax.block_until_ready(
        inter_attention(encoder_output, hidden, {'w': gw, 'b': gb}, method='general'))
    energy_ref = jnp.tanh(encoder_output @ gw.T + gb)
    ref_general = jax.nn.softmax(jnp.squeeze(energy_ref @ hidden, axis=2), axis=1)
    assert out_general.shape == (B, S)
    assert jnp.allclose(out_general, ref_general, atol=1e-5, rtol=1e-5)

    # ---- method='dot' ----
    out_dot = jax.block_until_ready(
        inter_attention(encoder_output, hidden, {}, method='dot'))
    ref_dot = jax.nn.softmax(jnp.squeeze(encoder_output @ hidden, axis=2), axis=1)
    assert jnp.allclose(out_dot, ref_dot, atol=1e-5, rtol=1e-5)

    # ---- method='no_query' ----
    nw, nb = _linear_params(ks[3], 1, D)
    out_nq = jax.block_until_ready(
        inter_attention(encoder_output, hidden, {'w': nw, 'b': nb}, method='no_query'))
    ref_nq = jax.nn.softmax(jnp.squeeze(encoder_output @ nw.T + nb, axis=2), axis=1)
    assert jnp.allclose(out_nq, ref_nq, atol=1e-5, rtol=1e-5)

    # ---- method='concat' ----
    cw, cb = _linear_params(ks[4], D, 2 * D)
    vw, vb = _linear_params(ks[5], 1, D)
    out_cat = jax.block_until_ready(
        inter_attention(encoder_output, hidden,
                        {'w': cw, 'b': cb, 'v_w': vw, 'v_b': vb}, method='concat'))
    h_exp = jnp.broadcast_to(jnp.transpose(hidden, (0, 2, 1)), (B, S, D))
    cat = jnp.concatenate([h_exp, encoder_output], axis=2)
    energy_c = jnp.tanh(cat @ cw.T + cb)
    ref_cat = jax.nn.softmax(jnp.squeeze(energy_c @ vw.T + vb, axis=2), axis=1)
    assert jnp.allclose(out_cat, ref_cat, atol=1e-5, rtol=1e-5)

    print("KERNEL_OK")
</pallas_src>

<mosaic_0001>
module attributes {stable_mosaic.version = 11 : i64} {
  func.func @_general_kernel(%arg0: i32, %arg1: memref<2x8x128xf32, #tpu.memory_space<vmem>>, %arg2: memref<128x128xf32, #tpu.memory_space<vmem>>, %arg3: memref<1x128xf32, #tpu.memory_space<vmem>>, %arg4: memref<2x1x128xf32, #tpu.memory_space<vmem>>, %arg5: memref<2x8xf32, #tpu.memory_space<vmem>>) attributes {dimension_semantics = [#tpu.dimension_semantics<parallel>], iteration_bounds = array<i64: 1>, scalar_prefetch = 0 : i64, scratch_operands = 0 : i64, tpu.core_type = #tpu.core_type<tc>, window_params = [{transform_indices = @transform_0, window_bounds = array<i64: 2, 8, 128>}, {pipeline_mode = #tpu.pipeline_mode<synchronous>, transform_indices = @transform_1, window_bounds = array<i64: 128, 128>}, {pipeline_mode = #tpu.pipeline_mode<synchronous>, transform_indices = @transform_2, window_bounds = array<i64: 1, 128>}, {transform_indices = @transform_3, window_bounds = array<i64: 2, 1, 128>}, {transform_indices = @transform_4, window_bounds = array<i64: 2, 8>}]} {
    %c0 = arith.constant 0 : index
    %c0_0 = arith.constant 0 : index
    %c0_1 = arith.constant 0 : index
    %0 = vector.load %arg1[%c0, %c0_0, %c0_1] : memref<2x8x128xf32, #tpu.memory_space<vmem>>, vector<2x8x128xf32>
    %1 = vector.shape_cast %0 : vector<2x8x128xf32> to vector<16x128xf32>
    %c0_2 = arith.constant 0 : index
    %c0_3 = arith.constant 0 : index
    %2 = vector.load %arg2[%c0_2, %c0_3] : memref<128x128xf32, #tpu.memory_space<vmem>>, vector<128x128xf32>
    %cst = arith.constant dense<0.000000e+00> : vector<16x128xf32>
    %3 = tpu.matmul %1, %2, %cst {dimension_numbers = #tpu.dot_dimension_numbers<[1], [0], [0], [1], [0, 0, 1, 1], [], []>} : vector<16x128xf32>, vector<128x128xf32>, vector<16x128xf32> -> vector<16x128xf32>
    %c0_4 = arith.constant 0 : index
    %c0_5 = arith.constant 0 : index
    %4 = vector.load %arg3[%c0_4, %c0_5] : memref<1x128xf32, #tpu.memory_space<vmem>>, vector<1x128xf32>
    %5 = vector.broadcast %4 : vector<1x128xf32> to vector<16x128xf32>
    %6 = arith.addf %3, %5 : vector<16x128xf32>
    %7 = math.tanh %6 : vector<16x128xf32>
    %8 = vector.shape_cast %7 : vector<16x128xf32> to vector<2x8x128xf32>
    %c0_6 = arith.constant 0 : index
    %c0_7 = arith.constant 0 : index
    %c0_8 = arith.constant 0 : index
    %9 = vector.load %arg4[%c0_6, %c0_7, %c0_8] : memref<2x1x128xf32, #tpu.memory_space<vmem>>, vector<2x1x128xf32>
    %10 = vector.broadcast %9 : vector<2x1x128xf32> to vector<2x8x128xf32>
    %11 = arith.mulf %8, %10 : vector<2x8x128xf32>
    %cst_9 = arith.constant dense<0.000000e+00> : vector<2x8xf32>
    %12 = vector.multi_reduction <add>, %11, %cst_9 [2] : vector<2x8x128xf32> to vector<2x8xf32>
    %cst_10 = arith.constant dense<0xFF800000> : vector<2xf32>
    %13 = vector.multi_reduction <maximumf>, %12, %cst_10 [1] : vector<2x8xf32> to vector<2xf32>
    %14 = vector.shape_cast %13 : vector<2xf32> to vector<2x1xf32>
    %15 = vector.broadcast %14 : vector<2x1xf32> to vector<2x8xf32>
    %16 = arith.subf %12, %15 : vector<2x8xf32>
    %17 = math.exp %16 : vector<2x8xf32>
    %cst_11 = arith.constant dense<0.000000e+00> : vector<2xf32>
    %18 = vector.multi_reduction <add>, %17, %cst_11 [1] : vector<2x8xf32> to vector<2xf32>
    %19 = vector.shape_cast %18 : vector<2xf32> to vector<2x1xf32>
    %20 = tpu.reciprocal %19 : vector<2x1xf32> -> vector<2x1xf32>
    %21 = vector.broadcast %20 : vector<2x1xf32> to vector<2x8xf32>
    %22 = arith.mulf %17, %21 : vector<2x8xf32>
    %c0_12 = arith.constant 0 : index
    %c0_13 = arith.constant 0 : index
    %23 = vector.load %arg5[%c0_12, %c0_13] : memref<2x8xf32, #tpu.memory_space<vmem>>, vector<2x8xf32>
    tpu.vector_store %arg5[%c0_12, %c0_13], %22 {strides = array<i32>} : memref<2x8xf32, #tpu.memory_space<vmem>>, vector<2x8xf32>,
    return
  }
  func.func @transform_0(%arg0: i32) -> (i32, i32, i32) {
    %c0_i32 = arith.constant 0 : i32
    %c0_i32_0 = arith.constant 0 : i32
    %c0_i32_1 = arith.constant 0 : i32
    return %arg0, %c0_i32, %c0_i32_0 : i32, i32, i32
  }
  func.func @transform_1(%arg0: i32) -> (i32, i32) {
    %c0_i32 = arith.constant 0 : i32
    %c0_i32_0 = arith.constant 0 : i32
    %c0_i32_1 = arith.constant 0 : i32
    return %c0_i32, %c0_i32_0 : i32, i32
  }
  func.func @transform_2(%arg0: i32) -> (i32, i32) {
    %c0_i32 = arith.constant 0 : i32
    %c0_i32_0 = arith.constant 0 : i32
    %c0_i32_1 = arith.constant 0 : i32
    return %c0_i32, %c0_i32_0 : i32, i32
  }
  func.func @transform_3(%arg0: i32) -> (i32, i32, i32) {
    %c0_i32 = arith.constant 0 : i32
    %c0_i32_0 = arith.constant 0 : i32
    %c0_i32_1 = arith.constant 0 : i32
    return %arg0, %c0_i32, %c0_i32_0 : i32, i32, i32
  }
  func.func @transform_4(%arg0: i32) -> (i32, i32) {
    %c0_i32 = arith.constant 0 : i32
    %c0_i32_0 = arith.constant 0 : i32
    return %arg0, %c0_i32 : i32, i32
  }
}

</mosaic_0001>

<bundles_post_ra>
// kernel: tpu_custom_call.1
= control target key start
LH: loop header
LB: loop body
LE: loop exit
PB: predicated region body
PF: predicated region fallthrough
CT: control target
= control target key end

     0   :  { %9 = vsyncpa [#allocation3], 0  ;;  %s469_s0 = inlined_call_operand.hbm [shape: f32[2,8,128], index: 0, kind: input, shape index: {}]   ;;  %s470_s1 = inlined_call_operand.hbm [shape: f32[128,128], index: 1, kind: input, shape index: {}]   ;;  %s471_s2 = inlined_call_operand.vmem [shape: f32[1,128], index: 2, kind: input, shape index: {}]   ;;  %s472_s3 = inlined_call_operand.vmem [shape: f32[2,1,128], index: 3, kind: input, shape index: {}]   ;;  %s473_s4 = inlined_call_operand.hbm [shape: f32[2,8], index: 4, kind: output, shape index: {}]  }
   0x1   :  { %10 = vsyncpa [#allocation6], 0 }
   0x2   :  { %11 = vsyncpa [#allocation4], 0  ;;  %s414_s15 = smov [#allocation2]  }
   0x3   :  { %s17_s16 = sshll.u32 %s414_s15, 4  ;;  %s18_s16 = int_to_ptr.vmem [resolvable:$true] %s17_s16 }
   0x4   :  { %s356_s17 = scalar_lea.vmem %s18_s16, 256  ;;  %p361_p1 = scmp.lt.s32.totalorder %s18_s16, %s18_s16 }
   0x5   :  { %p357_p0 = scmp.ne.s32.totalorder %s18_s16, %s356_s17  ;;  %p362_p2 = scmp.lt.s32.totalorder %s356_s17, %s356_s17 }
   0x7   :  { %p363_p3 = por %p362_p2, %p361_p1 }
   0x9   :  { %p364_p4 = pnand %p363_p3, %p357_p0 }
   0xb   :  { %367 = shalt.err (!%p364_p4)
}
   0xc   :  { %s415_s18 = smov 128   ;;  %s416_s19 = smov 8  }
   0xd   :  { %23 = dma.hbm_to_vmem [thread:$0]  %s469_s0, 256, %s18_s16, [#allocation3], %s415_s18, %s415_s18, %s416_s19  }
   0xe   :  { %s417_s22 = smov [#allocation5]  }
   0xf   :  { %s29_s23 = sshll.u32 %s417_s22, 4  ;;  %s30_s23 = int_to_ptr.vmem [resolvable:$true] %s29_s23 }
  0x10   :  { %s376_s24 = scalar_lea.vmem %s30_s23, 2048  ;;  %p381_p6 = scmp.lt.s32.totalorder %s30_s23, %s30_s23 }
  0x11   :  { %p377_p5 = scmp.ne.s32.totalorder %s30_s23, %s376_s24  ;;  %p382_p7 = scmp.lt.s32.totalorder %s376_s24, %s376_s24 }
  0x13   :  { %p383_p8 = por %p382_p7, %p381_p6 }
  0x15   :  { %p384_p9 = pnand %p383_p8, %p377_p5 }
  0x17   :  { %387 = shalt.err (!%p384_p9)
}
  0x18   :  { %35 = dma.hbm_to_vmem [thread:$0]  %s470_s1, 2048, %s30_s23, [#allocation6], %s415_s18, %s415_s18, %s416_s19  }
  0x19   :  { %408 = dma.done.wait [#allocation3], 256  }
  0x1a   :  { %409 = vsyncadd [#allocation3], 4294967040 }
  0x1b   :  { %410 = dma.done.wait [#allocation6], 2048  }
  0x1c   :  { %411 = vsyncadd [#allocation6], 4294965248  ;;  %v63_v0 = vld [vmem:[#allocation5 + $0x78] sm:$0xff]  ;;  %v62_v1 = vld [vmem:[#allocation5 + $0x70] sm:$0xff]  ;;  %v170_v29 = vlaneseq  ;;  %vm180_vm0 = vcmask 1041409   ;;  %vm183_vm1 = vcmask 58368  }
  0x1d   :  { %295 = vmatprep.subr.mxu0 %v63_v0  ;;  %v61_v2 = vld [vmem:[#allocation5 + $0x68] sm:$0xff]  ;;  %v60_v3 = vld [vmem:[#allocation5 + $0x60] sm:$0xff]  ;;  %v46_v4 = vld [vmem:[#allocation2] sm:$0xff]  ;;  %v418_v39 = vmov 0  }
  0x1e   :  { %296 = vmatpush3.msra.mxu0 %v63_v0  ;;  %v59_v5 = vld [vmem:[#allocation5 + $0x58] sm:$0xff]  ;;  %327 = vmatprep.mubr.f32.mxu0 %v46_v4  ;;  %v58_v6 = vld [vmem:[#allocation5 + $0x50] sm:$0xff]  ;;  %v57_v7 = vld [vmem:[#allocation5 + $0x48] sm:$0xff]  ;;  %v171_v30 = vand.u32 127, %v170_v29  ;;  %v173_v31 = vshrl.u32 %v170_v29, 7 }
  0x1f   :  { %297 = vmatprep.subr.mxu0 %v62_v1  ;;  %v56_v8 = vld [vmem:[#allocation5 + $0x40] sm:$0xff]  ;;  %v55_v9 = vld [vmem:[#allocation5 + $0x38] sm:$0xff]  ;;  %v54_v10 = vld [vmem:[#allocation5 + $0x30] sm:$0xff]  ;;  %337 = vset.pattern.permute.xlu0 %v418_v39 }
  0x20   :  { %298 = vmatpush3.msra.mxu0 %v62_v1  ;;  %v53_v11 = vld [vmem:[#allocation5 + $0x28] sm:$0xff]  ;;  %v52_v12 = vld [vmem:[#allocation5 + $0x20] sm:$0xff]  ;;  %v51_v13 = vld [vmem:[#allocation5 + $0x18] sm:$0xff]  ;;  %v174_v33 = vsub.s32 %v171_v30, %v173_v31  ;;  %336 = vset.pattern.permute.xlu1 %v418_v39  ;;  %v190_v40 = vsub.s32 0, %v173_v31  ;;  %v194_v41 = vsub.s32 1, %v173_v31 }
  0x21   :  { %299 = vmatprep.subr.mxu0 %v61_v2  ;;  %v50_v14 = vld [vmem:[#allocation5 + $0x10] sm:$0xff]  ;;  %v49_v15 = vld [vmem:[#allocation5 + $0x8] sm:$0xff]  ;;  %v48_v16 = vld [vmem:[#allocation5] sm:$0xff] }
  0x22   :  { %300 = vmatpush3.msra.mxu0 %v61_v2  ;;  %v47_v17 = vld [vmem:[#allocation2 + $0x8] sm:$0xff]  ;;  %v274_v19 = vld [vmem:[%s471_s2] ss:$0 sm:$0xff]  ;;  %v276_v27 = vld [vmem:[%s472_s3 + $0x1] ss:$0 sm:$0xff]  ;;  %s419_s2 = smov [#allocation7]  }
  0x23   :  { %301 = vmatprep.subr.mxu0 %v60_v3  ;;  %v275_v23 = vld [vmem:[%s472_s3] ss:$0 sm:$0xff]  ;;  %s264_s3 = sshll.u32 %s419_s2, 4  ;;  %s265_s3 = int_to_ptr.vmem [resolvable:$true] %s264_s3 }
  0x24   :  { %302 = vmatpush3.msra.mxu0 %v60_v3  ;;  %s388_s5 = scalar_lea.vmem %s265_s3, 32  ;;  %p393_p11 = scmp.lt.s32.totalorder %s265_s3, %s265_s3 }
  0x25   :  { %303 = vmatprep.subr.mxu0 %v59_v5  ;;  %p389_p10 = scmp.ne.s32.totalorder %s265_s3, %s388_s5  ;;  %p394_p12 = scmp.lt.s32.totalorder %s388_s5, %s388_s5 }
  0x26   :  { %304 = vmatpush3.msra.mxu0 %v59_v5 }
  0x27   :  { %305 = vmatprep.subr.mxu0 %v58_v6  ;;  %p395_p13 = por %p394_p12, %p393_p11 }
  0x28   :  { %306 = vmatpush3.msra.mxu0 %v58_v6 }
  0x29   :  { %307 = vmatprep.subr.mxu0 %v57_v7  ;;  %p396_p0 = pnand %p395_p13, %p389_p10 }
  0x2a   :  { %308 = vmatpush3.msra.mxu0 %v57_v7 }
  0x2b   :  { %309 = vmatprep.subr.mxu0 %v56_v8 }
  0x2c   :  { %310 = vmatpush3.msra.mxu0 %v56_v8 }
  0x2d   :  { %311 = vmatprep.subr.mxu0 %v55_v9 }
  0x2e   :  { %312 = vmatpush3.msra.mxu0 %v55_v9 }
  0x2f   :  { %313 = vmatprep.subr.mxu0 %v54_v10 }
  0x30   :  { %314 = vmatpush3.msra.mxu0 %v54_v10 }
  0x31   :  { %315 = vmatprep.subr.mxu0 %v53_v11 }
  0x32   :  { %316 = vmatpush3.msra.mxu0 %v53_v11 }
  0x33   :  { %317 = vmatprep.subr.mxu0 %v52_v12 }
  0x34   :  { %318 = vmatpush3.msra.mxu0 %v52_v12 }
  0x35   :  { %319 = vmatprep.subr.mxu0 %v51_v13 }
  0x36   :  { %320 = vmatpush3.msra.mxu0 %v51_v13 }
  0x37   :  { %321 = vmatprep.subr.mxu0 %v50_v14 }
  0x38   :  { %322 = vmatpush3.msra.mxu0 %v50_v14 }
  0x39   :  { %323 = vmatprep.subr.mxu0 %v49_v15 }
  0x3a   :  { %324 = vmatpush3.msra.mxu0 %v49_v15 }
  0x3b   :  { %325 = vmatprep.subr.mxu0 %v48_v16 }
  0x3c   :  { %326 = vmatpush3.msra.mxu0 %v48_v16 }
  0x3d   :  { %328 = vmatmul.mubr.f32.vlgmr.msra.gmra.mxu0 %v47_v17 }
  0xfd   :  { %v329_v18 = vpop.f32.mrf.mxu0 }
  0xfe   :  { %v143_v21 = vadd.f32 %v329_v18, %v274_v19 }
  0xff   :  { %v137_v20 = vpop.f32.mrf.mxu0 }
 0x100   :  { %v138_v22 = vadd.f32 %v274_v19, %v137_v20 }
 0x102   :  { %338 = vtanh.f32 %v138_v22 }
 0x103   :  { %340 = vtanh.f32 %v143_v21 }
 0x10f   :  { %v339_v24 = vpop.eup %338 }
 0x110   :  { %v162_v25 = vmul.f32 %v339_v24, %v275_v23  ;;  %v341_v26 = vpop.eup %340 }
 0x111   :  { %v163_v28 = vmul.f32 %v341_v26, %v276_v27 }
 0x112   :  { %164 = vadd.xlane.f32.xlu0 %v162_v25 }
 0x116   :  { %166 = vadd.xlane.f32.xlu0 %v163_v28 }
 0x19b   :  { %v165_v32 = vpop.xlane.xlu0 %164 }
 0x19c   :  { %v175_v35 = vrot.slane %v165_v32, %v174_v33 }
 0x19f   :  { %v167_v34 = vpop.xlane.xlu0 %166 }
 0x1a0   :  { %v179_v36 = vrot.slane %v167_v34, %v174_v33 }
 0x1a2   :  { %v181_v37 = vsel %vm180_vm0, %v179_v36, %v175_v35 }
 0x1a3   :  { %v184_v38 = vsel %vm183_vm1, %v181_v37, -inf }
 0x1a4   :  { %185 = vmax.xlane.f32.xlu1 %v184_v38 }
 0x22d   :  { %v186_v42 = vpop.xlane.xlu1 %185 }
 0x22e   :  { %v191_v43 = vrot.slane %v186_v42, %v190_v40  ;;  %v195_v44 = vrot.slane %v186_v42, %v194_v41 }
 0x230   :  { %v198_v45 = vsub.f32 %v165_v32, %v191_v43  ;;  %v199_v46 = vsub.f32 %v167_v34, %v195_v44 }
 0x232   :  { %v200_v47 = vmul.f32 1.442695, %v198_v45  ;;  %v202_v48 = vmul.f32 1.442695, %v199_v46 }
 0x234   :  { %342 = vpow2.f32 %v200_v47 }
 0x235   :  { %344 = vpow2.f32 %v202_v48 }
 0x241   :  { %v343_v49 = vpop.eup %342 }
 0x242   :  { %v345_v50 = vpop.eup %344  ;;  %207 = vperm.xlu1 %336, %v343_v49  }
 0x243   :  { %210 = vperm.xlu0 %337, %v345_v50  }
 0x2bd   :  { %v208_v51 = vpop.permute.xlu1 %207 }
 0x2be   :  { %v211_v52 = vpop.permute.xlu0 %210  ;;  %v215_v53 = vrot.slane %v208_v51, %v174_v33 }
 0x2bf   :  { %v219_v54 = vrot.slane %v211_v52, %v174_v33 }
 0x2c1   :  { %v220_v55 = vsel %vm180_vm0, %v219_v54, %v215_v53 }
 0x2c2   :  { %v222_v56 = vsel %vm183_vm1, %v220_v55, 0.0 }
 0x2c3   :  { %223 = vadd.xlane.f32.xlu1 %v222_v56 }
 0x34c   :  { %v224_v57 = vpop.xlane.xlu1 %223 }
 0x34d   :  { %346 = vrcp.f32 %v224_v57 }
 0x35a   :  { %v347_v58 = vpop.eup %346 }
 0x35b   :  { %v230_v59 = vrot.slane %v347_v58, %v190_v40  ;;  %v234_v61 = vrot.slane %v347_v58, %v194_v41 }
 0x35d   :  { %v237_v60 = vmul.f32 %v343_v49, %v230_v59  ;;  %v238_v62 = vmul.f32 %v345_v50, %v234_v61 }
 0x35f   :  { %242 = vperm.xlu0 %337, %v237_v60  }
 0x363   :  { %245 = vperm.xlu0 %337, %v238_v62  }
 0x3da   :  { %v243_v63 = vpop.permute.xlu0 %242 }
 0x3db   :  { %v250_v1 = vrot.slane %v243_v63, %v174_v33 }
 0x3de   :  { %v246_v0 = vpop.permute.xlu0 %245 }
 0x3df   :  { %v254_v2 = vrot.slane %v246_v0, %v174_v33 }
 0x3e1   :  { %v255_v3 = vsel %vm180_vm0, %v254_v2, %v250_v1 }
 0x3e2   :  { %257 = vst.msk [vmem:[#allocation7] sm:$0x3] %vm183_vm1, %v255_v3 }
 0x3e3   :  { %399 = shalt.err (!%p396_p0)
}
 0x3e4   :  { %267 = dma.vmem_to_hbm [thread:$0]  %s265_s3, 32, %s473_s4, [#allocation4]  }
 0x3e5   :  { %412 = dma.done.wait [#allocation4], 32  }
 0x3e6   :  { %413 = vsyncadd [#allocation4], 4294967264 }
 0x3e7   :  { %271 = vsyncpa [#allocation3], 1 }
 0x3e8   :  { %272 = vsyncpa [#allocation6], 1 }
 0x3e9   :  { %273 = vsyncpa [#allocation4], 1 }

</bundles_post_ra>
